<compile_context>
chip_gen: v5e
topology: v5e:2x2
jax: 0.10.0
libtpu: 0.0.40
codegen_flags: <defaults>
</compile_context>

<pallas_src>
import math

import jax
import jax.numpy as jnp
from jax.experimental import pallas as pl
from jax.experimental.pallas import tpu as pltpu

_LANE = 128          # lane width (last dim granularity)
_SUBLANE_BF16 = 16   # bf16 sublane packing (second-to-last dim granularity)


def _round_up(x, m):
    return ((x + m - 1) // m) * m


def _pad2d(a, rows, cols):
    """Zero-pad a 2-D array up to (rows, cols); no-op (no copy) if already there."""
    r, c = a.shape
    if r == rows and c == cols:
        return a
    return jnp.pad(a, ((0, rows - r), (0, cols - c)))


def _pick_tile(dim, target, unit):
    """Largest multiple of `unit` that divides `dim` and is <= max(target, unit)."""
    best = unit
    cand = unit
    limit = min(dim, max(target, unit))
    while cand <= limit:
        if dim % cand == 0:
            best = cand
        cand += unit
    return best


# ---------------------------------------------------------------------------
# Kernels
# ---------------------------------------------------------------------------
def _linear_kernel(x_ref, w_ref, b_ref, o_ref):
    """One (tm, tn) output tile; K (reduction) is the last grid axis.

    The out BlockSpec index_map ignores k, so the f32 output tile stays resident
    in VMEM across the K axis: initialize with the broadcast bias at k == 0,
    accumulate MXU partials directly, no scratch and no finalize pass.
    """
    @pl.when(pl.program_id(2) == 0)
    def _init():
        o_ref[...] = jnp.broadcast_to(b_ref[...], o_ref.shape)

    o_ref[...] += jnp.dot(x_ref[...], w_ref[...],
                          preferred_element_type=jnp.float32)


def _linear_single_block_kernel(x_ref, w_ref, b_ref, o_ref):
    """Fast path: whole (padded) problem fits in one tile; no grid, no reduction."""
    o_ref[...] = jnp.dot(x_ref[...], w_ref[...],
                         preferred_element_type=jnp.float32) + b_ref[...]


# ---------------------------------------------------------------------------
# Parameter preparation (do ONCE at init, reuse across forward calls)
# ---------------------------------------------------------------------------
def prepare_linear_params(weight, bias=None, *, param_dtype=jnp.bfloat16):
    """Transform PyTorch-layout nn.Linear parameters for the kernel.

    weight: (out_channels, in_channels)  ->  w_p: (Kp, Np) param_dtype (transposed, padded)
    bias:   (out_channels,) or None      ->  b_p: (1, Np)  float32
    """
    out_ch, in_ch = weight.shape
    kp = _round_up(in_ch, _LANE)
    np_ = _round_up(out_ch, _LANE)
    w_p = _pad2d(jnp.asarray(weight).T.astype(param_dtype), kp, np_)
    if bias is None:
        # TODO(synk): bias=None still adds a zero bias tile per output tile (harmless, tiny).
        b_p = jnp.zeros((1, np_), jnp.float32)
    else:
        b_p = _pad2d(jnp.asarray(bias, jnp.float32).reshape(1, out_ch), 1, np_)
    return w_p, b_p, out_ch, in_ch


# ---------------------------------------------------------------------------
# Forward
# ---------------------------------------------------------------------------
def linear_apply(x, w_p, b_p, out_ch, in_ch, *, tm=512, tn=512, tk=512,
                 x_dtype=jnp.bfloat16):
    """y = x @ W.T + b using prepared (transposed/padded/bf16) parameters."""
    *lead, k_in = x.shape
    assert k_in == in_ch, "in_channels mismatch"
    kp, np_ = w_p.shape
    m = int(math.prod(lead)) if lead else 1
    mp = _round_up(m, _SUBLANE_BF16)

    # --- shape-aware tile selection ---------------------------------------
    # Skinny-N (the HGNN case: small out_channels, big batch*seq): cover all of
    # N in one tile so x is streamed from HBM exactly once; grow tm to amortize
    # per-grid-step overhead.  Symmetric case for skinny-M.
    if np_ <= 2 * _LANE and mp >= 1024:
        tm = max(tm, 1024)
    elif mp <= 2 * _LANE and np_ >= 1024:
        tn = max(tn, 1024)
    tn = _pick_tile(np_, tn, _LANE)
    tk = _pick_tile(kp, tk, _LANE)
    tm = min(tm, mp)                      # both multiples of 16
    mp = _round_up(mp, tm)                # pad M only if the tile doesn't divide

    grid_m, grid_n, grid_k = mp // tm, np_ // tn, kp // tk

    # x: cast to bf16 for the MXU; zero-pad K (required for the reduction) and
    # M (tile alignment).  _pad2d is a no-op when already aligned.
    x_p = _pad2d(x.reshape(m, in_ch).astype(x_dtype), mp, kp)

    # --- small-problem fast path: single block, no grid machinery ----------
    if grid_m == 1 and grid_n == 1 and grid_k == 1:
        out_p = pl.pallas_call(
            _linear_single_block_kernel,
            out_shape=jax.ShapeDtypeStruct((mp, np_), jnp.float32),
        )(x_p, w_p, b_p)
        return out_p[:m, :out_ch].reshape(*lead, out_ch)

    # --- tiled, pipelined matmul -------------------------------------------
    itemsize_x = x_p.dtype.itemsize
    itemsize_w = w_p.dtype.itemsize
    cost = pl.CostEstimate(
        flops=2 * mp * kp * np_,
        transcendentals=0,
        bytes_accessed=int(itemsize_x * mp * kp * grid_n     # x re-read per N tile
                           + itemsize_w * kp * np_ * grid_m  # W re-read per M tile
                           + 4 * np_ * grid_m                # bias per M tile
                           + 4 * mp * np_),                  # f32 output once
    )

    # VMEM budget: double-buffered bf16 x/w tiles + f32 bias + f32 output tile.
    vmem_need = 2 * (tm * tk * itemsize_x + tk * tn * itemsize_w
                     + tn * 4 + tm * tn * 4)
    vmem_limit = int(min(64 * 1024 * 1024, max(32 * 1024 * 1024, 2 * vmem_need)))

    out_p = pl.pallas_call(
        _linear_kernel,
        out_shape=jax.ShapeDtypeStruct((mp, np_), jnp.float32),
        grid_spec=pltpu.PrefetchScalarGridSpec(
            num_scalar_prefetch=0,
            # M leads: for this module M = batch*seq is the long parallel axis,
            # so v7x megacore sharding splits it across the two TensorCores.
            grid=(grid_m, grid_n, grid_k),
            in_specs=[
                pl.BlockSpec((tm, tk), lambda i, j, k: (i, k)),   # x tile (bf16)
                pl.BlockSpec((tk, tn), lambda i, j, k: (k, j)),   # W tile (bf16)
                pl.BlockSpec((1, tn), lambda i, j, k: (0, j)),    # bias (f32)
            ],
            out_specs=pl.BlockSpec((tm, tn), lambda i, j, k: (i, j)),
        ),
        compiler_params=pltpu.CompilerParams(
            dimension_semantics=("parallel", "parallel", "arbitrary"),
            vmem_limit_bytes=vmem_limit,
        ),
        cost_estimate=cost,
    )(x_p, w_p, b_p)

    return out_p[:m, :out_ch].reshape(*lead, out_ch)


def linear(x, weight, bias=None, **kwargs):
    """Convenience one-shot wrapper (PyTorch nn.Linear semantics, weight (out, in)).

    For repeated calls, use prepare_linear_params() once + linear_apply() so the
    weight transpose/pad/cast is not redone (and re-read from HBM) every forward.
    """
    w_p, b_p, out_ch, in_ch = prepare_linear_params(weight, bias)
    return linear_apply(x, w_p, b_p, out_ch, in_ch, **kwargs)


def init_linear_params(key, in_channels, out_channels, bias=True):
    """Matches the module: xavier_normal_(weight), zeros_(bias)."""
    std = math.sqrt(2.0 / (in_channels + out_channels))
    w = std * jax.random.normal(key, (out_channels, in_channels), jnp.float32)
    b = jnp.zeros((out_channels,), jnp.float32) if bias else None
    return w, b


if __name__ == "__main__":
    root = jax.random.PRNGKey(0)
    kx, kw, kx2, kw2 = jax.random.split(root, 4)

    # --- Case 1: small shapes from the module (batch=2, seq=16, in=32, out=32).
    batch, seq, in_ch, out_ch = 2, 16, 32, 32
    x = jax.random.normal(kx, (batch, seq, in_ch), jnp.float32)
    weight, bias = init_linear_params(kw, in_ch, out_ch, bias=True)

    w_p, b_p, n_out, k_in = prepare_linear_params(weight, bias)   # once, at "init"
    out = linear_apply(x, w_p, b_p, n_out, k_in)
    jax.block_until_ready(out)

    ref = jnp.einsum("bsi,oi->bso", x, weight) + bias
    assert out.shape == (batch, seq, out_ch)
    assert out.dtype == jnp.float32
    assert jnp.allclose(out, ref, rtol=5e-2, atol=5e-2)

    # --- Case 2: exercises the tiled path (grid_m=2, grid_k=2, skinny-N tn).
    b2, s2, in2, out2 = 2, 1024, 768, 96
    x2 = jax.random.normal(kx2, (b2, s2, in2), jnp.float32)
    w2, bias2 = init_linear_params(kw2, in2, out2, bias=True)

    w2_p, b2_p, n2_out, k2_in = prepare_linear_params(w2, bias2)
    out2_arr = linear_apply(x2, w2_p, b2_p, n2_out, k2_in)
    jax.block_until_ready(out2_arr)

    ref2 = jnp.einsum("bsi,oi->bso", x2, w2) + bias2
    assert out2_arr.shape == (b2, s2, out2)
    assert jnp.allclose(out2_arr, ref2, rtol=5e-2, atol=5e-2)

    print("KERNEL_OK")
</pallas_src>

<mosaic_0001>
module attributes {stable_mosaic.version = 11 : i64} {
  func.func @_linear_single_block_kernel(%arg0: memref<32x128xbf16, #tpu.memory_space<vmem>>, %arg1: memref<128x128xbf16, #tpu.memory_space<vmem>>, %arg2: memref<1x128xf32, #tpu.memory_space<vmem>>, %arg3: memref<32x128xf32, #tpu.memory_space<vmem>>) attributes {dimension_semantics = [], scalar_prefetch = 0 : i64, scratch_operands = 0 : i64, tpu.core_type = #tpu.core_type<tc>} {
    %c0 = arith.constant 0 : index
    %c0_0 = arith.constant 0 : index
    %0 = vector.load %arg0[%c0, %c0_0] : memref<32x128xbf16, #tpu.memory_space<vmem>>, vector<32x128xbf16>
    %c0_1 = arith.constant 0 : index
    %c0_2 = arith.constant 0 : index
    %1 = vector.load %arg1[%c0_1, %c0_2] : memref<128x128xbf16, #tpu.memory_space<vmem>>, vector<128x128xbf16>
    %cst = arith.constant dense<0.000000e+00> : vector<32x128xf32>
    %2 = tpu.matmul %0, %1, %cst {dimension_numbers = #tpu.dot_dimension_numbers<[1], [0], [0], [1], [0, 0, 1, 1], [], []>} : vector<32x128xbf16>, vector<128x128xbf16>, vector<32x128xf32> -> vector<32x128xf32>
    %c0_3 = arith.constant 0 : index
    %c0_4 = arith.constant 0 : index
    %3 = vector.load %arg2[%c0_3, %c0_4] : memref<1x128xf32, #tpu.memory_space<vmem>>, vector<1x128xf32>
    %4 = vector.broadcast %3 : vector<1x128xf32> to vector<32x128xf32>
    %5 = arith.addf %2, %4 : vector<32x128xf32>
    %c0_5 = arith.constant 0 : index
    %c0_6 = arith.constant 0 : index
    %6 = vector.load %arg3[%c0_5, %c0_6] : memref<32x128xf32, #tpu.memory_space<vmem>>, vector<32x128xf32>
    tpu.vector_store %arg3[%c0_5, %c0_6], %5 {strides = array<i32>} : memref<32x128xf32, #tpu.memory_space<vmem>>, vector<32x128xf32>,
    return
  }
}

</mosaic_0001>

<bundles_post_ra>
// kernel: tpu_custom_call.1
= control target key start
LH: loop header
LB: loop body
LE: loop exit
PB: predicated region body
PF: predicated region fallthrough
CT: control target
= control target key end

     0   :  { %8 = vsyncpa [#allocation3], 0  ;;  %s357_s0 = inlined_call_operand.hbm [shape: bf16[32,128], index: 0, kind: input, shape index: {}]   ;;  %s358_s1 = inlined_call_operand.hbm [shape: bf16[128,128], index: 1, kind: input, shape index: {}]   ;;  %s359_s2 = inlined_call_operand.vmem [shape: f32[1,128], index: 2, kind: input, shape index: {}]   ;;  %s360_s3 = inlined_call_operand.hbm [shape: f32[32,128], index: 3, kind: output, shape index: {}]  }
   0x1   :  { %9 = vsyncpa [#allocation6], 0 }
   0x2   :  { %10 = vsyncpa [#allocation4], 0  ;;  %s15_s14 = sshll.u32 %s357_s0, 4  ;;  %s318_s15 = smov [#allocation2]   ;;  %s16_s14 = int_to_ptr.hbm [resolvable:$true] %s15_s14 }
   0x3   :  { %s17_s16 = sshll.u32 %s318_s15, 4  ;;  %s28_s19 = sshll.u32 %s358_s1, 4  ;;  %s18_s16 = int_to_ptr.vmem [resolvable:$true] %s17_s16  ;;  %s29_s19 = int_to_ptr.hbm [resolvable:$true] %s28_s19 }
   0x4   :  { %s319_s20 = smov 64   ;;  %s320_s21 = smov 4  }
   0x5   :  { %23 = dma.hbm_to_vmem [thread:$0]  %s16_s14, 256, %s18_s16, [#allocation3], %s319_s20, %s319_s20, %s320_s21  }
   0x6   :  { %s321_s22 = smov [#allocation5]  }
   0x7   :  { %s30_s23 = sshll.u32 %s321_s22, 4  ;;  %s31_s23 = int_to_ptr.vmem [resolvable:$true] %s30_s23 }
   0x8   :  { %36 = dma.hbm_to_vmem [thread:$0]  %s29_s19, 1024, %s31_s23, [#allocation6], %s319_s20, %s319_s20, %s320_s21  }
   0x9   :  { %312 = dma.done.wait [#allocation3], 256  }
   0xa   :  { %313 = vsyncadd [#allocation3], 4294967040 }
   0xb   :  { %314 = dma.done.wait [#allocation6], 1024  }
   0xc   :  { %315 = vsyncadd [#allocation6], 4294966272  ;;  %v223_v0 = vld [vmem:[#allocation5 + $0x38] sm:$0xff]  ;;  %v222_v1 = vld [vmem:[#allocation5 + $0x30] sm:$0xff]  ;;  %s322_s24 = smov [#allocation7]   ;;  %s160_s28 = sshll.u32 %s360_s3, 4  ;;  %s161_s28 = int_to_ptr.hbm [resolvable:$true] %s160_s28 }
   0xd   :  { %131 = vmatpush.bf16.msra.mxu0 %v223_v0  ;;  %224 = vmatpush.bf16.msra.mxu1 %v223_v0  ;;  %v221_v2 = vld [vmem:[#allocation5 + $0x28] sm:$0xff]  ;;  %v220_v3 = vld [vmem:[#allocation5 + $0x20] sm:$0xff]  ;;  %v219_v4 = vld [vmem:[#allocation5 + $0x18] sm:$0xff]  ;;  %s158_s25 = sshll.u32 %s322_s24, 4  ;;  %s324_s29 = smov 8   ;;  %s159_s25 = int_to_ptr.vmem [resolvable:$true] %s158_s25 }
   0xe   :  { %v218_v5 = vld [vmem:[#allocation5 + $0x10] sm:$0xff]  ;;  %v217_v6 = vld [vmem:[#allocation5 + $0x8] sm:$0xff]  ;;  %v216_v7 = vld [vmem:[#allocation5] sm:$0xff] }
   0xf   :  { %v214_v8 = vld [vmem:[#allocation2] sm:$0xff]  ;;  %v215_v9 = vld [vmem:[#allocation2 + $0x8] sm:$0xff] }
  0x10   :  { %v239_v10 = vld [vmem:[%s359_s2] ss:$0 sm:$0xff]  ;;  %s323_s2 = smov 128  }
  0x11   :  { %132 = vmatpush.bf16.msra.mxu0 %v222_v1  ;;  %225 = vmatpush.bf16.msra.mxu1 %v222_v1 }
  0x15   :  { %133 = vmatpush.bf16.msra.mxu0 %v221_v2  ;;  %226 = vmatpush.bf16.msra.mxu1 %v221_v2 }
  0x19   :  { %134 = vmatpush.bf16.msra.mxu0 %v220_v3  ;;  %227 = vmatpush.bf16.msra.mxu1 %v220_v3 }
  0x1d   :  { %135 = vmatpush.bf16.msra.mxu0 %v219_v4  ;;  %228 = vmatpush.bf16.msra.mxu1 %v219_v4 }
  0x21   :  { %136 = vmatpush.bf16.msra.mxu0 %v218_v5  ;;  %229 = vmatpush.bf16.msra.mxu1 %v218_v5 }
  0x25   :  { %137 = vmatpush.bf16.msra.mxu0 %v217_v6  ;;  %230 = vmatpush.bf16.msra.mxu1 %v217_v6 }
  0x29   :  { %138 = vmatpush.bf16.msra.mxu0 %v216_v7  ;;  %231 = vmatpush.bf16.msra.mxu1 %v216_v7 }
  0x2c   :  { %139 = vmatmul.bf16.vlgmr.msra.gmra.mxu0 %v214_v8  ;;  %144 = vmatmul.bf16.vlgmr.msra.gmra.mxu1 %v215_v9 }
  0xa9   :  { %v140_v11 = vpop.f32.mrf.mxu0  ;;  %v145_v12 = vpop.f32.mrf.mxu1 }
  0xaa   :  { %v141_v13 = vadd.f32 %v239_v10, %v140_v11  ;;  %v146_v14 = vadd.f32 %v239_v10, %v145_v12 }
  0xac   :  { %150 = vst [vmem:[#allocation7] sm:$0xff] %v141_v13 }
  0xad   :  { %152 = vst [vmem:[#allocation7 + $0x10] sm:$0xff] %v146_v14 }
  0xb1   :  { %v142_v15 = vpop.f32.mrf.mxu0  ;;  %v147_v16 = vpop.f32.mrf.mxu1 }
  0xb2   :  { %v143_v17 = vadd.f32 %v239_v10, %v142_v15  ;;  %v148_v18 = vadd.f32 %v239_v10, %v147_v16 }
  0xb4   :  { %151 = vst [vmem:[#allocation7 + $0x8] sm:$0xff] %v143_v17 }
  0xb5   :  { %153 = vst [vmem:[#allocation7 + $0x18] sm:$0xff] %v148_v18 }
  0xb6   :  { %166 = dma.vmem_to_hbm [thread:$0]  %s159_s25, 512, %s161_s28, [#allocation4], %s323_s2, %s323_s2, %s324_s29  }
  0xb7   :  { %316 = dma.done.wait [#allocation4], 512  }
  0xb8   :  { %317 = vsyncadd [#allocation4], 4294966784 }
  0xb9   :  { %171 = vsyncpa [#allocation3], 1 }
  0xba   :  { %172 = vsyncpa [#allocation6], 1 }
  0xbb   :  { %173 = vsyncpa [#allocation4], 1 }

</bundles_post_ra>
